<compile_context>
chip_gen: v6e
topology: v6e:2x2x1
jax: 0.10.0
libtpu: 0.0.40
codegen_flags: <defaults>
</compile_context>

<pallas_src>
import functools
import math

import jax
import jax.numpy as jnp
from jax.experimental import pallas as pl
from jax.experimental.pallas import tpu as pltpu

EPS = 1e-5


def _round_up(x, m):
    return ((x + m - 1) // m) * m


def conv_stats_kernel(w_ref, x_ref, xh_ref, m_ref, y_ref, sum_ref, sq_ref,
                      xbuf_ref, *, shifts, tq, cpad):
    """Implicit-GEMM conv tile + per-tile BatchNorm statistics.

    w_ref   : (taps, Cpad, Cin_pad) bf16  per-tap weight matrices
    x_ref   : (Cin_pad, TQ)         bf16  main lane tile of flattened padded input
    xh_ref  : (Cin_pad, HALO_W)     bf16  halo lanes (continuation) for shifted taps
    m_ref   : (1, TQ)               f32   1.0 where the lane is a real output position
    y_ref   : (Cpad, TQ)            f32   raw conv output tile (lane-dense, single write)
    sum_ref : (Cpad, 128)           f32   this tile's per-channel sum (broadcast on lanes)
    sq_ref  : (Cpad, 128)           f32   this tile's per-channel sum of squares
    xbuf_ref: (Cin_pad, TQ+HALO_W)  bf16  VMEM staging: tile + halo, contiguous
    """
    # Stage tile + halo contiguously so every tap is a static lane-shifted slice.
    xbuf_ref[:, :tq] = x_ref[...]
    xbuf_ref[:, tq:] = xh_ref[...]

    # Conv as a sum of tap-shifted matmuls on the MXU, f32 accumulation.
    acc = jnp.zeros((cpad, tq), jnp.float32)
    for tap, shift in enumerate(shifts):
        acc = acc + jnp.dot(w_ref[tap], xbuf_ref[:, shift:shift + tq],
                            preferred_element_type=jnp.float32)

    y_ref[...] = acc                      # single f32 write; never recomputed

    # BN statistics over valid lanes only (padding-grid lanes masked to 0).
    ym = acc * m_ref[...]
    s = jnp.sum(ym, axis=1, keepdims=True)          # (Cpad, 1)
    q = jnp.sum(ym * ym, axis=1, keepdims=True)     # (Cpad, 1)
    sum_ref[...] = jnp.broadcast_to(s, (cpad, 128))
    sq_ref[...] = jnp.broadcast_to(q, (cpad, 128))


def bn_relu_kernel(y_ref, scale_ref, shift_ref, o_ref):
    """Elementwise y*scale + shift, ReLU.  scale/shift are per-channel (Cpad,1)."""
    o_ref[...] = jnp.maximum(y_ref[...] * scale_ref[...] + shift_ref[...], 0.0)


def basic_conv(x_nchw, weight_oihw, gamma, beta, *, stride=1, padding=1,
               row_tile=1024):
    """Fused Conv2d(bias=False) + BatchNorm2d(train) + ReLU.  NCHW in/out."""
    N, Cin, H, W = x_nchw.shape
    Cout, Cin_w, KH, KW = weight_oihw.shape
    assert Cin == Cin_w
    assert stride == 1, "implicit-GEMM tap-shift path assumes stride=1"
    # TODO(synk): stride>1 / dilation / groups variants of nn.Conv2d.

    Hp, Wp = H + 2 * padding, W + 2 * padding
    Ho, Wo = Hp - KH + 1, Wp - KW + 1

    R = N * Ho * Wo          # true number of output positions (BN count)
    Q = N * Hp * Wp          # padded-grid positions = kernel lane axis

    Cin_pad = _round_up(Cin, 8)
    Cpad = _round_up(Cout, 16)          # bf16 sublane packing for the weight operand
    taps = KH * KW
    shifts = tuple(ki * Wp + kj for ki in range(KH) for kj in range(KW))
    max_shift = shifts[-1]
    HALO_W = _round_up(max(max_shift, 1), 128)

    # Lane tile: multiple of HALO_W (hence of 128); sized small enough that
    # double-buffered (Cin_pad*TQ*2 + Cpad*TQ*4) stays well inside scoped VMEM.
    TQ = _round_up(min(row_tile, Q), HALO_W)
    T = pl.cdiv(Q, TQ)
    Qtiles = T * TQ
    Qtot = Qtiles + TQ                   # extra zero tile so the halo block always exists

    # ---- input: channels-first, padded, flattened; bf16 BEFORE any inflation ----
    xt = jnp.transpose(x_nchw, (1, 0, 2, 3)).astype(jnp.bfloat16)      # (Cin,N,H,W)
    xp = jnp.pad(xt, ((0, Cin_pad - Cin), (0, 0),
                      (padding, padding), (padding, padding)))         # (Cin_pad,N,Hp,Wp)
    xf = jnp.pad(xp.reshape(Cin_pad, Q), ((0, 0), (0, Qtot - Q)))      # zero tail for halo

    # ---- per-tap weight matrices (taps, Cpad, Cin_pad), bf16 ----
    wt = jnp.transpose(weight_oihw, (2, 3, 0, 1)).reshape(taps, Cout, Cin)
    wt = jnp.pad(wt, ((0, 0), (0, Cpad - Cout),
                      (0, Cin_pad - Cin))).astype(jnp.bfloat16)

    # ---- lane-validity mask: real output positions on the padded grid ----
    qi = jnp.arange(Qtiles)
    oj = qi % Wp
    oi = (qi % (Hp * Wp)) // Wp
    valid = (oj < Wo) & (oi < Ho) & (qi < Q)
    mask = valid.astype(jnp.float32).reshape(1, Qtiles)

    kernel1 = functools.partial(conv_stats_kernel, shifts=shifts, tq=TQ, cpad=Cpad)

    y_flat, psum, psq = pl.pallas_call(
        kernel1,
        out_shape=(jax.ShapeDtypeStruct((Cpad, Qtiles), jnp.float32),
                   jax.ShapeDtypeStruct((Cpad, T * 128), jnp.float32),
                   jax.ShapeDtypeStruct((Cpad, T * 128), jnp.float32)),
        grid_spec=pltpu.PrefetchScalarGridSpec(
            num_scalar_prefetch=0,
            grid=(T,),
            in_specs=[
                pl.BlockSpec((taps, Cpad, Cin_pad), lambda t: (0, 0, 0)),   # weights
                pl.BlockSpec((Cin_pad, TQ), lambda t: (0, t)),              # main lanes
                pl.BlockSpec((Cin_pad, HALO_W),                             # halo lanes
                             lambda t: (0, (t + 1) * (TQ // HALO_W))),
                pl.BlockSpec((1, TQ), lambda t: (0, t)),                    # validity mask
            ],
            out_specs=(
                pl.BlockSpec((Cpad, TQ), lambda t: (0, t)),                 # raw conv
                pl.BlockSpec((Cpad, 128), lambda t: (0, t)),                # per-tile sum
                pl.BlockSpec((Cpad, 128), lambda t: (0, t)),                # per-tile sumsq
            ),
            scratch_shapes=[pltpu.VMEM((Cin_pad, TQ + HALO_W), jnp.bfloat16)],
        ),
        compiler_params=pltpu.CompilerParams(
            dimension_semantics=("parallel",),      # per-tile stats are independent
            vmem_limit_bytes=64 << 20),
        cost_estimate=pl.CostEstimate(
            flops=int(2 * Cpad * Cin_pad * taps * Qtiles),
            transcendentals=0,
            bytes_accessed=int(xf.size * 2 + mask.size * 4
                               + Cpad * Qtiles * 4 + 2 * Cpad * T * 128 * 4)),
    )(wt, xf, xf, mask)

    # ---- reduce tiny per-tile stats, compute BN scale/shift once (hoisted) ----
    inv_r = 1.0 / float(R)
    ssum = jnp.sum(psum[:, ::128], axis=1)                   # (Cpad,)
    ssq = jnp.sum(psq[:, ::128], axis=1)                     # (Cpad,)
    mean = ssum * inv_r
    var = jnp.maximum(ssq * inv_r - mean * mean, 0.0)        # clamp: cancellation-safe
    g = jnp.pad(gamma.astype(jnp.float32), (0, Cpad - Cout))
    b = jnp.pad(beta.astype(jnp.float32), (0, Cpad - Cout))
    scale_c = g * jax.lax.rsqrt(var + EPS)
    shift_c = b - mean * scale_c
    scale2 = scale_c.reshape(Cpad, 1)
    shift2 = shift_c.reshape(Cpad, 1)

    # ---- elementwise BN + ReLU pass over the stored conv output ----
    out_flat = pl.pallas_call(
        bn_relu_kernel,
        out_shape=jax.ShapeDtypeStruct((Cpad, Qtiles), jnp.float32),
        grid_spec=pltpu.PrefetchScalarGridSpec(
            num_scalar_prefetch=0,
            grid=(T,),
            in_specs=[
                pl.BlockSpec((Cpad, TQ), lambda t: (0, t)),
                pl.BlockSpec((Cpad, 1), lambda t: (0, 0)),
                pl.BlockSpec((Cpad, 1), lambda t: (0, 0)),
            ],
            out_specs=pl.BlockSpec((Cpad, TQ), lambda t: (0, t)),
        ),
        compiler_params=pltpu.CompilerParams(
            dimension_semantics=("parallel",),
            vmem_limit_bytes=64 << 20),
    )(y_flat, scale2, shift2)

    # Drop padded channels / invalid padded-grid positions; back to NCHW.
    out = out_flat[:Cout, :Q].reshape(Cout, N, Hp, Wp)[:, :, :Ho, :Wo]
    return jnp.transpose(out, (1, 0, 2, 3))


def reference(x, w, gamma, beta, *, stride=1, padding=1):
    y = jax.lax.conv_general_dilated(
        x, w, window_strides=(stride, stride),
        padding=((padding, padding), (padding, padding)),
        dimension_numbers=("NCHW", "OIHW", "NCHW"))
    mean = y.mean(axis=(0, 2, 3), keepdims=True)
    var = ((y - mean) ** 2).mean(axis=(0, 2, 3), keepdims=True)
    y = (y - mean) / jnp.sqrt(var + EPS)
    y = y * gamma.reshape(1, -1, 1, 1) + beta.reshape(1, -1, 1, 1)
    return jnp.maximum(y, 0.0)


if __name__ == "__main__":
    # Module config: BasicConv(in_planes=4, out_planes=8, kernel_size=3,
    #                          stride=1, padding=1, relu=True, bn=True, bias=False)
    N, Cin, H, W = 2, 4, 16, 16
    Cout, K = 8, 3

    key = jax.random.PRNGKey(0)
    kx, kw = jax.random.split(key)
    x = jax.random.normal(kx, (N, Cin, H, W), dtype=jnp.float32)

    # Conv2d kaiming-uniform-style bound, deterministic via PRNGKey(0).
    fan_in = Cin * K * K
    bound = 1.0 / math.sqrt(fan_in)
    weight = jax.random.uniform(kw, (Cout, Cin, K, K), dtype=jnp.float32,
                                minval=-bound, maxval=bound)
    # BN affine params (non-trivial to exercise the affine path).
    gamma = 1.0 + 0.1 * jnp.arange(Cout, dtype=jnp.float32)
    beta = 0.01 * jnp.arange(Cout, dtype=jnp.float32)

    # row_tile=384 -> Q=648 splits into 2 lane tiles, exercising the tiled
    # partial-stats path (grid=(2,)) and the halo block on the tile boundary.
    out = basic_conv(x, weight, gamma, beta, stride=1, padding=1, row_tile=384)
    out = jax.block_until_ready(out)

    # Reference on bf16-rounded inputs (kernel feeds the MXU in bf16 with f32
    # accumulation); BN/ReLU fully in f32.
    xb = x.astype(jnp.bfloat16).astype(jnp.float32)
    wb = weight.astype(jnp.bfloat16).astype(jnp.float32)
    ref = reference(xb, wb, gamma, beta, stride=1, padding=1)

    assert out.shape == (N, Cout, H, W), out.shape
    err = float(jnp.abs(out - ref).max())
    assert jnp.allclose(out, ref, rtol=2e-3, atol=2e-3), err

    print("KERNEL_OK")
</pallas_src>

<mosaic_0001>
module attributes {stable_mosaic.version = 11 : i64} {
  func.func @conv_stats_kernel(%arg0: i32, %arg1: memref<9x16x8xbf16, #tpu.memory_space<vmem>>, %arg2: memref<8x384xbf16, #tpu.memory_space<vmem>>, %arg3: memref<8x128xbf16, #tpu.memory_space<vmem>>, %arg4: memref<1x384xf32, #tpu.memory_space<vmem>>, %arg5: memref<16x384xf32, #tpu.memory_space<vmem>>, %arg6: memref<16x128xf32, #tpu.memory_space<vmem>>, %arg7: memref<16x128xf32, #tpu.memory_space<vmem>>, %arg8: memref<8x512xbf16, #tpu.memory_space<vmem>>) attributes {dimension_semantics = [#tpu.dimension_semantics<parallel>], iteration_bounds = array<i64: 2>, scalar_prefetch = 0 : i64, scratch_operands = 1 : i64, tpu.core_type = #tpu.core_type<tc>, window_params = [{pipeline_mode = #tpu.pipeline_mode<synchronous>, transform_indices = @transform_0, window_bounds = array<i64: 9, 16, 8>}, {transform_indices = @transform_1, window_bounds = array<i64: 8, 384>}, {transform_indices = @transform_2, window_bounds = array<i64: 8, 128>}, {transform_indices = @transform_3, window_bounds = array<i64: 1, 384>}, {transform_indices = @transform_4, window_bounds = array<i64: 16, 384>}, {transform_indices = @transform_5, window_bounds = array<i64: 16, 128>}, {transform_indices = @transform_6, window_bounds = array<i64: 16, 128>}]} {
    %c0 = arith.constant 0 : index
    %c0_0 = arith.constant 0 : index
    %0 = vector.load %arg2[%c0, %c0_0] : memref<8x384xbf16, #tpu.memory_space<vmem>>, vector<8x384xbf16>
    %c0_1 = arith.constant 0 : index
    %c0_2 = arith.constant 0 : index
    %1 = vector.load %arg8[%c0_1, %c0_2] : memref<8x512xbf16, #tpu.memory_space<vmem>>, vector<8x384xbf16>
    tpu.vector_store %arg8[%c0_1, %c0_2], %0 {strides = array<i32>} : memref<8x512xbf16, #tpu.memory_space<vmem>>, vector<8x384xbf16>,
    %c0_3 = arith.constant 0 : index
    %c0_4 = arith.constant 0 : index
    %2 = vector.load %arg3[%c0_3, %c0_4] : memref<8x128xbf16, #tpu.memory_space<vmem>>, vector<8x128xbf16>
    %c0_5 = arith.constant 0 : index
    %c384 = arith.constant 384 : index
    %3 = vector.load %arg8[%c0_5, %c384] : memref<8x512xbf16, #tpu.memory_space<vmem>>, vector<8x128xbf16>
    tpu.vector_store %arg8[%c0_5, %c384], %2 {strides = array<i32>} : memref<8x512xbf16, #tpu.memory_space<vmem>>, vector<8x128xbf16>,
    %cst = arith.constant 0.000000e+00 : f32
    %4 = vector.broadcast %cst : f32 to vector<16x384xf32>
    %c0_6 = arith.constant 0 : index
    %c0_7 = arith.constant 0 : index
    %c0_8 = arith.constant 0 : index
    %5 = vector.load %arg1[%c0_6, %c0_7, %c0_8] : memref<9x16x8xbf16, #tpu.memory_space<vmem>>, vector<1x16x8xbf16>
    %6 = vector.shape_cast %5 : vector<1x16x8xbf16> to vector<16x8xbf16>
    %c0_9 = arith.constant 0 : index
    %c0_10 = arith.constant 0 : index
    %7 = vector.load %arg8[%c0_9, %c0_10] : memref<8x512xbf16, #tpu.memory_space<vmem>>, vector<8x384xbf16>
    %cst_11 = arith.constant dense<0.000000e+00> : vector<16x384xf32>
    %8 = tpu.matmul %6, %7, %cst_11 {dimension_numbers = #tpu.dot_dimension_numbers<[1], [0], [0], [1], [0, 0, 1, 1], [], []>} : vector<16x8xbf16>, vector<8x384xbf16>, vector<16x384xf32> -> vector<16x384xf32>
    %9 = arith.addf %4, %8 : vector<16x384xf32>
    %c1 = arith.constant 1 : index
    %c0_12 = arith.constant 0 : index
    %c0_13 = arith.constant 0 : index
    %10 = vector.load %arg1[%c1, %c0_12, %c0_13] : memref<9x16x8xbf16, #tpu.memory_space<vmem>>, vector<1x16x8xbf16>
    %11 = vector.shape_cast %10 : vector<1x16x8xbf16> to vector<16x8xbf16>
    %c0_14 = arith.constant 0 : index
    %c1_15 = arith.constant 1 : index
    %12 = vector.load %arg8[%c0_14, %c1_15] : memref<8x512xbf16, #tpu.memory_space<vmem>>, vector<8x384xbf16>
    %cst_16 = arith.constant dense<0.000000e+00> : vector<16x384xf32>
    %13 = tpu.matmul %11, %12, %cst_16 {dimension_numbers = #tpu.dot_dimension_numbers<[1], [0], [0], [1], [0, 0, 1, 1], [], []>} : vector<16x8xbf16>, vector<8x384xbf16>, vector<16x384xf32> -> vector<16x384xf32>
    %14 = arith.addf %9, %13 : vector<16x384xf32>
    %c2 = arith.constant 2 : index
    %c0_17 = arith.constant 0 : index
    %c0_18 = arith.constant 0 : index
    %15 = vector.load %arg1[%c2, %c0_17, %c0_18] : memref<9x16x8xbf16, #tpu.memory_space<vmem>>, vector<1x16x8xbf16>
    %16 = vector.shape_cast %15 : vector<1x16x8xbf16> to vector<16x8xbf16>
    %c0_19 = arith.constant 0 : index
    %c2_20 = arith.constant 2 : index
    %17 = vector.load %arg8[%c0_19, %c2_20] : memref<8x512xbf16, #tpu.memory_space<vmem>>, vector<8x384xbf16>
    %cst_21 = arith.constant dense<0.000000e+00> : vector<16x384xf32>
    %18 = tpu.matmul %16, %17, %cst_21 {dimension_numbers = #tpu.dot_dimension_numbers<[1], [0], [0], [1], [0, 0, 1, 1], [], []>} : vector<16x8xbf16>, vector<8x384xbf16>, vector<16x384xf32> -> vector<16x384xf32>
    %19 = arith.addf %14, %18 : vector<16x384xf32>
    %c3 = arith.constant 3 : index
    %c0_22 = arith.constant 0 : index
    %c0_23 = arith.constant 0 : index
    %20 = vector.load %arg1[%c3, %c0_22, %c0_23] : memref<9x16x8xbf16, #tpu.memory_space<vmem>>, vector<1x16x8xbf16>
    %21 = vector.shape_cast %20 : vector<1x16x8xbf16> to vector<16x8xbf16>
    %c0_24 = arith.constant 0 : index
    %c18 = arith.constant 18 : index
    %22 = vector.load %arg8[%c0_24, %c18] : memref<8x512xbf16, #tpu.memory_space<vmem>>, vector<8x384xbf16>
    %cst_25 = arith.constant dense<0.000000e+00> : vector<16x384xf32>
    %23 = tpu.matmul %21, %22, %cst_25 {dimension_numbers = #tpu.dot_dimension_numbers<[1], [0], [0], [1], [0, 0, 1, 1], [], []>} : vector<16x8xbf16>, vector<8x384xbf16>, vector<16x384xf32> -> vector<16x384xf32>
    %24 = arith.addf %19, %23 : vector<16x384xf32>
    %c4 = arith.constant 4 : index
    %c0_26 = arith.constant 0 : index
    %c0_27 = arith.constant 0 : index
    %25 = vector.load %arg1[%c4, %c0_26, %c0_27] : memref<9x16x8xbf16, #tpu.memory_space<vmem>>, vector<1x16x8xbf16>
    %26 = vector.shape_cast %25 : vector<1x16x8xbf16> to vector<16x8xbf16>
    %c0_28 = arith.constant 0 : index
    %c19 = arith.constant 19 : index
    %27 = vector.load %arg8[%c0_28, %c19] : memref<8x512xbf16, #tpu.memory_space<vmem>>, vector<8x384xbf16>
    %cst_29 = arith.constant dense<0.000000e+00> : vector<16x384xf32>
    %28 = tpu.matmul %26, %27, %cst_29 {dimension_numbers = #tpu.dot_dimension_numbers<[1], [0], [0], [1], [0, 0, 1, 1], [], []>} : vector<16x8xbf16>, vector<8x384xbf16>, vector<16x384xf32> -> vector<16x384xf32>
    %29 = arith.addf %24, %28 : vector<16x384xf32>
    %c5 = arith.constant 5 : index
    %c0_30 = arith.constant 0 : index
    %c0_31 = arith.constant 0 : index
    %30 = vector.load %arg1[%c5, %c0_30, %c0_31] : memref<9x16x8xbf16, #tpu.memory_space<vmem>>, vector<1x16x8xbf16>
    %31 = vector.shape_cast %30 : vector<1x16x8xbf16> to vector<16x8xbf16>
    %c0_32 = arith.constant 0 : index
    %c20 = arith.constant 20 : index
    %32 = vector.load %arg8[%c0_32, %c20] : memref<8x512xbf16, #tpu.memory_space<vmem>>, vector<8x384xbf16>
    %cst_33 = arith.constant dense<0.000000e+00> : vector<16x384xf32>
    %33 = tpu.matmul %31, %32, %cst_33 {dimension_numbers = #tpu.dot_dimension_numbers<[1], [0], [0], [1], [0, 0, 1, 1], [], []>} : vector<16x8xbf16>, vector<8x384xbf16>, vector<16x384xf32> -> vector<16x384xf32>
    %34 = arith.addf %29, %33 : vector<16x384xf32>
    %c6 = arith.constant 6 : index
    %c0_34 = arith.constant 0 : index
    %c0_35 = arith.constant 0 : index
    %35 = vector.load %arg1[%c6, %c0_34, %c0_35] : memref<9x16x8xbf16, #tpu.memory_space<vmem>>, vector<1x16x8xbf16>
    %36 = vector.shape_cast %35 : vector<1x16x8xbf16> to vector<16x8xbf16>
    %c0_36 = arith.constant 0 : index
    %c36 = arith.constant 36 : index
    %37 = vector.load %arg8[%c0_36, %c36] : memref<8x512xbf16, #tpu.memory_space<vmem>>, vector<8x384xbf16>
    %cst_37 = arith.constant dense<0.000000e+00> : vector<16x384xf32>
    %38 = tpu.matmul %36, %37, %cst_37 {dimension_numbers = #tpu.dot_dimension_numbers<[1], [0], [0], [1], [0, 0, 1, 1], [], []>} : vector<16x8xbf16>, vector<8x384xbf16>, vector<16x384xf32> -> vector<16x384xf32>
    %39 = arith.addf %34, %38 : vector<16x384xf32>
    %c7 = arith.constant 7 : index
    %c0_38 = arith.constant 0 : index
    %c0_39 = arith.constant 0 : index
    %40 = vector.load %arg1[%c7, %c0_38, %c0_39] : memref<9x16x8xbf16, #tpu.memory_space<vmem>>, vector<1x16x8xbf16>
    %41 = vector.shape_cast %40 : vector<1x16x8xbf16> to vector<16x8xbf16>
    %c0_40 = arith.constant 0 : index
    %c37 = arith.constant 37 : index
    %42 = vector.load %arg8[%c0_40, %c37] : memref<8x512xbf16, #tpu.memory_space<vmem>>, vector<8x384xbf16>
    %cst_41 = arith.constant dense<0.000000e+00> : vector<16x384xf32>
    %43 = tpu.matmul %41, %42, %cst_41 {dimension_numbers = #tpu.dot_dimension_numbers<[1], [0], [0], [1], [0, 0, 1, 1], [], []>} : vector<16x8xbf16>, vector<8x384xbf16>, vector<16x384xf32> -> vector<16x384xf32>
    %44 = arith.addf %39, %43 : vector<16x384xf32>
    %c8 = arith.constant 8 : index
    %c0_42 = arith.constant 0 : index
    %c0_43 = arith.constant 0 : index
    %45 = vector.load %arg1[%c8, %c0_42, %c0_43] : memref<9x16x8xbf16, #tpu.memory_space<vmem>>, vector<1x16x8xbf16>
    %46 = vector.shape_cast %45 : vector<1x16x8xbf16> to vector<16x8xbf16>
    %c0_44 = arith.constant 0 : index
    %c38 = arith.constant 38 : index
    %47 = vector.load %arg8[%c0_44, %c38] : memref<8x512xbf16, #tpu.memory_space<vmem>>, vector<8x384xbf16>
    %cst_45 = arith.constant dense<0.000000e+00> : vector<16x384xf32>
    %48 = tpu.matmul %46, %47, %cst_45 {dimension_numbers = #tpu.dot_dimension_numbers<[1], [0], [0], [1], [0, 0, 1, 1], [], []>} : vector<16x8xbf16>, vector<8x384xbf16>, vector<16x384xf32> -> vector<16x384xf32>
    %49 = arith.addf %44, %48 : vector<16x384xf32>
    %c0_46 = arith.constant 0 : index
    %c0_47 = arith.constant 0 : index
    %50 = vector.load %arg5[%c0_46, %c0_47] : memref<16x384xf32, #tpu.memory_space<vmem>>, vector<16x384xf32>
    tpu.vector_store %arg5[%c0_46, %c0_47], %49 {strides = array<i32>} : memref<16x384xf32, #tpu.memory_space<vmem>>, vector<16x384xf32>,
    %c0_48 = arith.constant 0 : index
    %c0_49 = arith.constant 0 : index
    %51 = vector.load %arg4[%c0_48, %c0_49] : memref<1x384xf32, #tpu.memory_space<vmem>>, vector<1x384xf32>
    %52 = vector.broadcast %51 : vector<1x384xf32> to vector<16x384xf32>
    %53 = arith.mulf %49, %52 : vector<16x384xf32>
    %cst_50 = arith.constant dense<0.000000e+00> : vector<16xf32>
    %54 = vector.multi_reduction <add>, %53, %cst_50 [1] : vector<16x384xf32> to vector<16xf32>
    %55 = vector.shape_cast %54 : vector<16xf32> to vector<16x1xf32>
    %56 = arith.mulf %53, %53 : vector<16x384xf32>
    %cst_51 = arith.constant dense<0.000000e+00> : vector<16xf32>
    %57 = vector.multi_reduction <add>, %56, %cst_51 [1] : vector<16x384xf32> to vector<16xf32>
    %58 = vector.shape_cast %57 : vector<16xf32> to vector<16x1xf32>
    %59 = vector.shape_cast %55 : vector<16x1xf32> to vector<16x1xf32>
    %60 = vector.broadcast %59 : vector<16x1xf32> to vector<16x128xf32>
    %c0_52 = arith.constant 0 : index
    %c0_53 = arith.constant 0 : index
    %61 = vector.load %arg6[%c0_52, %c0_53] : memref<16x128xf32, #tpu.memory_space<vmem>>, vector<16x128xf32>
    tpu.vector_store %arg6[%c0_52, %c0_53], %60 {strides = array<i32>} : memref<16x128xf32, #tpu.memory_space<vmem>>, vector<16x128xf32>,
    %62 = vector.shape_cast %58 : vector<16x1xf32> to vector<16x1xf32>
    %63 = vector.broadcast %62 : vector<16x1xf32> to vector<16x128xf32>
    %c0_54 = arith.constant 0 : index
    %c0_55 = arith.constant 0 : index
    %64 = vector.load %arg7[%c0_54, %c0_55] : memref<16x128xf32, #tpu.memory_space<vmem>>, vector<16x128xf32>
    tpu.vector_store %arg7[%c0_54, %c0_55], %63 {strides = array<i32>} : memref<16x128xf32, #tpu.memory_space<vmem>>, vector<16x128xf32>,
    return
  }
  func.func @transform_0(%arg0: i32) -> (i32, i32, i32) {
    %c0_i32 = arith.constant 0 : i32
    %c0_i32_0 = arith.constant 0 : i32
    %c0_i32_1 = arith.constant 0 : i32
    %c0_i32_2 = arith.constant 0 : i32
    return %c0_i32, %c0_i32_0, %c0_i32_1 : i32, i32, i32
  }
  func.func @transform_1(%arg0: i32) -> (i32, i32) {
    %c0_i32 = arith.constant 0 : i32
    %c0_i32_0 = arith.constant 0 : i32
    return %c0_i32, %arg0 : i32, i32
  }
  func.func @transform_2(%arg0: i32) -> (i32, i32) {
    %c1_i32 = arith.constant 1 : i32
    %0 = arith.addi %arg0, %c1_i32 : i32
    %c3_i32 = arith.constant 3 : i32
    %1 = arith.muli %0, %c3_i32 : i32
    %c0_i32 = arith.constant 0 : i32
    %c0_i32_0 = arith.constant 0 : i32
    return %c0_i32, %1 : i32, i32
  }
  func.func @transform_3(%arg0: i32) -> (i32, i32) {
    %c0_i32 = arith.constant 0 : i32
    %c0_i32_0 = arith.constant 0 : i32
    return %c0_i32, %arg0 : i32, i32
  }
  func.func @transform_4(%arg0: i32) -> (i32, i32) {
    %c0_i32 = arith.constant 0 : i32
    %c0_i32_0 = arith.constant 0 : i32
    return %c0_i32, %arg0 : i32, i32
  }
  func.func @transform_5(%arg0: i32) -> (i32, i32) {
    %c0_i32 = arith.constant 0 : i32
    %c0_i32_0 = arith.constant 0 : i32
    return %c0_i32, %arg0 : i32, i32
  }
  func.func @transform_6(%arg0: i32) -> (i32, i32) {
    %c0_i32 = arith.constant 0 : i32
    %c0_i32_0 = arith.constant 0 : i32
    return %c0_i32, %arg0 : i32, i32
  }
}

</mosaic_0001>

<bundles_post_ra>
// kernel: tpu_custom_call.1
= control target key start
LH: loop header
LB: loop body
LE: loop exit
PB: predicated region body
PF: predicated region fallthrough
CT: control target
= control target key end

     0   :  { %12 = vsyncpa [#allocation4], 0  ;;  %s2458_s0 = inlined_call_operand.vmem [shape: bf16[9,16,8], index: 0, kind: input, shape index: {}]   ;;  %s2459_s1 = inlined_call_operand.vmem [shape: bf16[8,1152], index: 1, kind: input, shape index: {}]   ;;  %s2460_s2 = inlined_call_operand.vmem [shape: bf16[8,1152], index: 2, kind: input, shape index: {}]   ;;  %s2461_s3 = inlined_call_operand.vmem [shape: f32[1,768], index: 3, kind: input, shape index: {}]   ;;  %s2462_s4 = inlined_call_operand.hbm [shape: f32[16,768], index: 4, kind: output, shape index: {0}]   ;;  %s2463_s5 = inlined_call_operand.hbm [shape: f32[16,256], index: 5, kind: output, shape index: {1}]   ;;  %s2464_s6 = inlined_call_operand.hbm [shape: f32[16,256], index: 6, kind: output, shape index: {2}]  }
   0x1   :  { %14 = vsyncpa [#allocation4 + $0x1], 0 }
   0x2   :  { %15 = vsyncpa [#allocation6], 0 }
   0x3   :  { %17 = vsyncpa [#allocation6 + $0x1], 0  ;;  %s2079_s21 = smov 0   ;;  %s2081_s22 = smov 0  }
   0x4   :  { %s2083_s23 = smov 0   ;;  %s2085_s24 = smov 0  }
   0x5 LB: > { %s2100_s25 = sadd.s32 4294967295, %s2022_s24   ;;  %s2465_s26 = sadd.s32 4294967294, %s2022_s24   ;;  %s2022_s24 = sphi %s2085_s24, %s2472_s24   ;;  %s2018_s23 = sphi %s2083_s23, %s2471_s23   ;;  %s2014_s22 = sphi %s2081_s22, %s2470_s22   ;;  %s2010_s21 = sphi %s2079_s21, %s2469_s21  }
   0x6   : > { %s2104_s27 = sadd.s32 1, %s2022_s24   ;;  %s133_s28 = sadd.s32 1, %s2018_s23 }
   0x7   : > { %s130_s29 = ssub.s32 %s2022_s24, %s2104_s27  ;;  %p143_p0 = scmp.ne.s32.totalorder %s2018_s23, %s2014_s22 }
   0x8   : > { %p131_p1 = scmp.eq.s32.totalorder %s130_s29, 0  ;;  %p144_p2 = scmp.eq.s32.totalorder %s2100_s25, 1 }
   0x9   : > { %p149_p3 = scmp.ne.s32.totalorder %s2014_s22, %s2010_s21  ;;  %p150_p4 = scmp.eq.s32.totalorder %s2465_s26, 1 }
   0xa   : > { %s2117_s30 = scalar_select %p131_p1, %s2018_s23, %s133_s28  }
   0xb   : > { %p2119_p5 = por %p144_p2, %p143_p0  ;;  %p2123_p6 = por %p150_p4, %p149_p3 }
   0xc   : > { %p1681_p7 = scmp.ge.s32.totalorder %s2022_s24, 1  ;;  %p251_p8 = scmp.lt.s32.totalorder %s2022_s24, 3 }
   0xe   : > { %p252_p9 = pnand %p1681_p7, %p251_p8 }
   0xf   : > { %s2130_s9 = smul.u32 (!%p252_p9), 3, %s2100_s25  ;;  %s307_s10 = sadd.s32 (!%p252_p9), 1, %s2100_s25 }
  0x10   : > { %255 = sbr.rel (%p252_p9) target bundleno = 603 (0x25b), region = 36  ;;  %s2024_s18 = smov (!%p252_p9), 127  }
  0x11   : > { %p302_p10 = scmp.lt.s32.totalorder (!%p252_p9), %s2130_s9, 8  ;;  %s308_s11 = smul.u32 (!%p252_p9), 3, %s307_s10 }
  0x12   : > { %s2028_s29 = smov (!%p252_p9), 126   ;;  %s2029_s10 = smov (!%p252_p9), 110  }
  0x13   : > { %p309_p11 = scmp.lt.s32.totalorder (!%p252_p9), %s308_s11, 8  ;;  %s2033_s14 = smov (!%p252_p9), 91  }
  0x14   : > { %s2034_s15 = smov (!%p252_p9), 90   ;;  %p316_p12 = scmp.lt.s32.totalorder (!%p252_p9), %s2130_s9, 5 }
  0x15   : > { %s303_s12 = scalar_select %p302_p10, %s2130_s9, 8  ;;  %v2025_v5 = vmov 0.0   ;;  %v2026_v6 = vmov 0   ;;  %vm2027_vm0 = vmmov 0   ;;  %vm360_vm1 = vcmask 1039360   ;;  %v1896_v18 = vld [vmem:[%s2458_s0 + $0x8] sm:$0xff]  }
  0x16   : > { %s2474_s11 = smov (!%p309_p11, %s308_s11), 8  ;;  %1771 = vmatprep.subr.bf16.mxu1 %v2025_v5  ;;  %410 = vmatprep.mubr.bf16.mxu0 %v2026_v6  ;;  %vm368_vm2 = vcmask 1043456   ;;  %vm364_vm3 = vcmask 64512   ;;  %vm587_vm4 = vcmask 1031168   ;;  %v1898_v30 = vld [vmem:[%s2458_s0] sm:$0xff]   ;;  %vm709_vm5 = vcmask 900096  }
  0x17   : > { %s1684_s13 = sshll.u32 %s303_s12, 2  ;;  %s1685_s17 = sshll.u32 %s2474_s11, 2  ;;  %1773 = vmatprep.mubr.msk.bf16.mxu1 %vm2027_vm0, %v2025_v5  ;;  %v1899_v40 = vld [vmem:[%s2458_s0 + $0x10] sm:$0xff]   ;;  %vm831_vm6 = vcmask 891904   ;;  %v1900_v50 = vld [vmem:[%s2458_s0 + $0x18] sm:$0xff]   ;;  %vm953_vm7 = vcmask 883712  }
  0x18   : > { %s305_s16 = scalar_lea.vmem %s2459_s1, %s1684_s13  ;;  %s312_s28 = scalar_lea.vmem %s2460_s2, %s1685_s17  ;;  %v1901_v60 = vld [vmem:[%s2458_s0 + $0x20] sm:$0xff]   ;;  %vm1075_vm8 = vcmask 752640   ;;  %vm1197_vm9 = vcmask 744448   ;;  %vm1319_vm10 = vcmask 736256  }
  0x19   : > { %v322_v0 = vld [vmem:[%s305_s16] sm:$0xff]  ;;  %v323_v1 = vld [vmem:[%s305_s16 + $0x8] sm:$0xf]  ;;  %s2030_s11 = smov 109   ;;  %s2031_s12 = smov 108  }
  0x1a   : > { %v2138_v2 = vcombine.low %v322_v0, %v322_v0  ;;  %325 = vst [vmem:[#allocation2 + $0x8] sm:$0xf] %v323_v1  ;;  %v2144_v3 = vcombine.high %v322_v0, %v322_v0  ;;  %v326_v4 = vld [vmem:[%s312_s28] sm:$0xf]  ;;  %s2032_s13 = smov 92   ;;  %s2476_s9 = smov (!%p316_p12, %s2130_s9), 5 }
  0x1b   : > { %327 = vst [vmem:[#allocation2 + $0xc] sm:$0xf] %v326_v4  ;;  %s2308_s28 = sand.u32 1, %s2014_s22   ;;  %s2035_s20 = smov [#allocation3]  }
  0x1c   : > { %352 = vrot.lane.b32.xlu0 %v2138_v2, %s2024_s18  ;;  %v479_v20 = vsel %vm368_vm2, %v2138_v2, 0 }
  0x20   : > { %354 = vrot.lane.b32.xlu0 %v2144_v3, %s2024_s18 }
  0x21   : > { %v1897_v21 = vld [vmem:[#allocation2 + $0x8] ss:$0 sps:$4 sm:$0xff]  }
  0x22   : > { %v336_v7 = vld [vmem:[#allocation2 + $0x8] sm:$0xff]  ;;  %v485_v26 = vsel %vm368_vm2, %v1897_v21, 0 }
  0x23   : > { %v1691_v8 = vcombine.low %v336_v7, %v336_v7  ;;  %v1692_v9 = vcombine.high %v336_v7, %v336_v7  ;;  %v1902_v7 = vld [vmem:[%s2458_s0 + $0x28] sm:$0xff]  }
  0x24   : > { %579 = vrot.lane.b32.xlu0 %v2138_v2, %s2028_s29 }
  0x25   : > { %356 = vrot.lane.b32.xlu1 %v1691_v8, %s2024_s18 }
  0x28   : > { %583 = vrot.lane.b32.xlu0 %v1691_v8, %s2028_s29 }
  0x29   : > { %358 = vrot.lane.b32.xlu1 %v1692_v9, %s2024_s18  ;;  %s1481_s18 = scalar_lea.sflag [#allocation4], %s2308_s28 }
  0x2c   : > { %701 = vrot.lane.b32.xlu0 %v2138_v2, %s2029_s10 }
  0x2d   : > { %581 = vrot.lane.b32.xlu1 %v2144_v3, %s2028_s29 }
  0x30   : > { %705 = vrot.lane.b32.xlu0 %v1691_v8, %s2029_s10 }
  0x31   : > { %585 = vrot.lane.b32.xlu1 %v1692_v9, %s2028_s29  ;;  %s1910_s29 = sshll.u32 %s2035_s20, 4  ;;  %s1911_s29 = int_to_ptr.vmem [resolvable:$false] %s1910_s29 }
  0x34   : > { %823 = vrot.lane.b32.xlu0 %v2138_v2, %s2030_s11 }
  0x35   : > { %703 = vrot.lane.b32.xlu1 %v2144_v3, %s2029_s10 }
  0x38   : > { %827 = vrot.lane.b32.xlu0 %v1691_v8, %s2030_s11 }
  0x39   : > { %707 = vrot.lane.b32.xlu1 %v1692_v9, %s2029_s10  ;;  %s1912_s10 = scalar_lea.vmem %s1911_s29, 1536 }
  0x3c   : > { %945 = vrot.lane.b32.xlu0 %v2138_v2, %s2031_s12 }
  0x3d   : > { %825 = vrot.lane.b32.xlu1 %v2144_v3, %s2030_s11 }
  0x40   : > { %949 = vrot.lane.b32.xlu0 %v1691_v8, %s2031_s12 }
  0x41   : > { %829 = vrot.lane.b32.xlu1 %v1692_v9, %s2030_s11  ;;  %s318_s11 = scalar_lea.vmem %s2461_s3, %s2476_s9 }
  0x44   : > { %1067 = vrot.lane.b32.xlu0 %v2138_v2, %s2032_s13 }
  0x45   : > { %947 = vrot.lane.b32.xlu1 %v2144_v3, %s2031_s12 }
  0x48   : > { %1071 = vrot.lane.b32.xlu0 %v1691_v8, %s2032_s13 }
  0x49   : > { %951 = vrot.lane.b32.xlu1 %v1692_v9, %s2031_s12  ;;  %s1825_s12 = smul.u32 48, %s2308_s28 }
  0x4b   : > { %s2321_s9 = scalar_lea.vmem [#allocation3], %s1825_s12 }
  0x4c   : > { %1189 = vrot.lane.b32.xlu0 %v2138_v2, %s2033_s14 }
  0x4d   : > { %1069 = vrot.lane.b32.xlu1 %v2144_v3, %s2032_s13 }
  0x50   : > { %1193 = vrot.lane.b32.xlu0 %v1691_v8, %s2033_s14 }
  0x51   : > { %1073 = vrot.lane.b32.xlu1 %v1692_v9, %s2032_s13  ;;  %s1504_s13 = sshll.u32 %s2321_s9, 4  ;;  %s2330_s13 = int_to_ptr.vmem [resolvable:$true] %s1504_s13 }
  0x52   : > { %s1906_s19 = scalar_lea.vmem %s2330_s13, 768  ;;  %p1913_p2 = scmp.lt.s32.totalorder %s2330_s13, %s1911_s29 }
  0x53   : > { %p1907_p13 = scmp.ne.s32.totalorder %s2330_s13, %s1906_s19  ;;  %p1914_p3 = scmp.lt.s32.totalorder %s1912_s10, %s1906_s19 }
  0x54   : > { %1311 = vrot.lane.b32.xlu0 %v2138_v2, %s2034_s15 }
  0x55   : > { %1191 = vrot.lane.b32.xlu1 %v2144_v3, %s2033_s14  ;;  %p1908_p0 = pnand %p1907_p13, %p2119_p5  ;;  %p1915_p4 = por %p1914_p3, %p1913_p2 }
  0x57   : > { %p1909_p1 = pneg %p1908_p0 }
  0x58   : > { %1315 = vrot.lane.b32.xlu0 %v1691_v8, %s2034_s15 }
  0x59   : > { %1195 = vrot.lane.b32.xlu1 %v1692_v9, %s2033_s14  ;;  %s1752_s14 = smul.u32 384, %s2100_s25  ;;  %p1916_p7 = pnand %p1915_p4, %p1909_p1 }
  0x5b   : > { %s2336_s17 = scalar_lea.hbm %s2462_s4, %s1752_s14 }
  0x5d   : > { %1313 = vrot.lane.b32.xlu1 %v2144_v3, %s2034_s15 }
  0x61   : > { %1317 = vrot.lane.b32.xlu1 %v1692_v9, %s2034_s15 }
  0x8e   : > { %v353_v10 = vpop.permute.xlu0 %352 }
  0x92   : > { %v355_v11 = vpop.permute.xlu0 %354 }
  0x93   : > { %v361_v13 = vsel %vm360_vm1, %v353_v10, %v355_v11 }
  0x94   : > { %v370_v17 = vsel %vm368_vm2, %v361_v13, 0 }
  0x96   : > { %v580_v12 = vpop.permute.xlu0 %579 }
  0x97   : > { %v357_v14 = vpop.permute.xlu1 %356 }
  0x98   : > { %v362_v16 = vsel %vm360_vm1, %v355_v11, %v357_v14 }
  0x99   : > { %1693 = vmatprep.subr.msk.bf16.mxu0 %vm368_vm2, %v362_v16 }
  0x9a   : > { %v584_v15 = vpop.permute.xlu0 %583  ;;  %393 = vmatpush1.bf16.msra.mxu0 %v370_v17  ;;  %v1903_v17 = vld [vmem:[%s2458_s0 + $0x30] sm:$0xff]  }
  0x9b   : > { %v359_v19 = vpop.permute.xlu1 %358  ;;  %1700 = vmatprep.subr.msk.bf16.mxu0 %vm368_vm2, %v2144_v3 }
  0x9c   : > { %v363_v23 = vsel %vm360_vm1, %v357_v14, %v359_v19 }
  0x9d   : > { %v376_v24 = vsel %vm368_vm2, %v363_v23, 0  ;;  %1694 = vmatmul.mubr.msk.bf16.vlgmr.msra.gmra.mxu0 %vm364_vm3, %v1896_v18 }
  0x9e   : > { %v702_v22 = vpop.permute.xlu0 %701  ;;  %1772 = vmatpush3.bf16.msra.mxu1 %v376_v24  ;;  %502 = vmatpush1.bf16.msra.mxu0 %v479_v20 }
  0x9f   : > { %v582_v25 = vpop.permute.xlu1 %581  ;;  %1777 = vmatprep.subr.bf16.mxu1 %v2025_v5  ;;  %519 = vmatprep.mubr.bf16.mxu0 %v2026_v6 }
  0xa0   : > { %v588_v28 = vsel %vm587_vm4, %v580_v12, %v582_v25  ;;  %v589_v29 = vsel %vm587_vm4, %v582_v25, %v584_v15 }
  0xa1   : > { %1774 = vmatmul.mubr.msk.bf16.vlgmr.msra.gmra.mxu1 %vm364_vm3, %v1896_v18  ;;  %1706 = vmatprep.subr.msk.bf16.mxu0 %vm368_vm2, %v589_v29  ;;  %v595_v31 = vsel %vm368_vm2, %v588_v28, 0 }
  0xa2   : > { %v706_v27 = vpop.permute.xlu0 %705  ;;  %1778 = vmatpush3.bf16.msra.mxu1 %v485_v26  ;;  %1779 = vmatprep.mubr.msk.bf16.mxu1 %vm2027_vm0, %v2025_v5  ;;  %v1904_v26 = vld [vmem:[%s2458_s0 + $0x38] sm:$0xff]  }
  0xa3   : > { %v586_v32 = vpop.permute.xlu1 %585  ;;  %1783 = vmatprep.subr.bf16.mxu1 %v2025_v5 }
  0xa4   : > { %v590_v34 = vsel %vm587_vm4, %v584_v15, %v586_v32 }
  0xa5   : > { %1701 = vmatmul.mubr.msk.bf16.vlgmr.msra.gmra.mxu0 %vm364_vm3, %v1898_v30  ;;  %v601_v35 = vsel %vm368_vm2, %v590_v34, 0 }
  0xa6   : > { %v824_v33 = vpop.permute.xlu0 %823  ;;  %618 = vmatpush1.bf16.msra.mxu0 %v595_v31  ;;  %635 = vmatprep.mubr.bf16.mxu0 %v2026_v6  ;;  %v1905_v31 = vld [vmem:[%s2458_s0 + $0x40] sm:$0xff]  }
  0xa7   : > { %v704_v36 = vpop.permute.xlu1 %703 }
  0xa8   : > { %v710_v38 = vsel %vm709_vm5, %v702_v22, %v704_v36  ;;  %v711_v39 = vsel %vm709_vm5, %v704_v36, %v706_v27 }
  0xa9   : > { %1780 = vmatmul.mubr.msk.bf16.vlgmr.msra.gmra.mxu1 %vm364_vm3, %v1898_v30  ;;  %1712 = vmatprep.subr.msk.bf16.mxu0 %vm368_vm2, %v711_v39  ;;  %v717_v41 = vsel %vm368_vm2, %v710_v38, 0 }
  0xaa   : > { %v828_v37 = vpop.permute.xlu0 %827  ;;  %1784 = vmatpush3.bf16.msra.mxu1 %v601_v35  ;;  %1785 = vmatprep.mubr.msk.bf16.mxu1 %vm2027_vm0, %v2025_v5 }
  0xab   : > { %v708_v42 = vpop.permute.xlu1 %707  ;;  %1789 = vmatprep.subr.bf16.mxu1 %v2025_v5 }
  0xac   : > { %v712_v44 = vsel %vm709_vm5, %v706_v27, %v708_v42 }
  0xad   : > { %1707 = vmatmul.mubr.msk.bf16.vlgmr.msra.gmra.mxu0 %vm364_vm3, %v1899_v40  ;;  %v723_v45 = vsel %vm368_vm2, %v712_v44, 0 }
  0xae   : > { %v946_v43 = vpop.permute.xlu0 %945  ;;  %740 = vmatpush1.bf16.msra.mxu0 %v717_v41  ;;  %757 = vmatprep.mubr.bf16.mxu0 %v2026_v6 }
  0xaf   : > { %v826_v46 = vpop.permute.xlu1 %825 }
  0xb0   : > { %v832_v48 = vsel %vm831_vm6, %v824_v33, %v826_v46  ;;  %v833_v49 = vsel %vm831_vm6, %v826_v46, %v828_v37 }
  0xb1   : > { %1786 = vmatmul.mubr.msk.bf16.vlgmr.msra.gmra.mxu1 %vm364_vm3, %v1899_v40  ;;  %1718 = vmatprep.subr.msk.bf16.mxu0 %vm368_vm2, %v833_v49  ;;  %v839_v51 = vsel %vm368_vm2, %v832_v48, 0 }
  0xb2   : > { %v950_v47 = vpop.permute.xlu0 %949  ;;  %1790 = vmatpush3.bf16.msra.mxu1 %v723_v45  ;;  %1791 = vmatprep.mubr.msk.bf16.mxu1 %vm2027_vm0, %v2025_v5 }
  0xb3   : > { %v830_v52 = vpop.permute.xlu1 %829  ;;  %1795 = vmatprep.subr.bf16.mxu1 %v2025_v5 }
  0xb4   : > { %v834_v54 = vsel %vm831_vm6, %v828_v37, %v830_v52 }
  0xb5   : > { %1713 = vmatmul.mubr.msk.bf16.vlgmr.msra.gmra.mxu0 %vm364_vm3, %v1900_v50  ;;  %v845_v55 = vsel %vm368_vm2, %v834_v54, 0 }
  0xb6   : > { %v1068_v53 = vpop.permute.xlu0 %1067  ;;  %862 = vmatpush1.bf16.msra.mxu0 %v839_v51  ;;  %879 = vmatprep.mubr.bf16.mxu0 %v2026_v6 }
  0xb7   : > { %v948_v56 = vpop.permute.xlu1 %947 }
  0xb8   : > { %v954_v58 = vsel %vm953_vm7, %v946_v43, %v948_v56  ;;  %v955_v59 = vsel %vm953_vm7, %v948_v56, %v950_v47 }
  0xb9   : > { %1792 = vmatmul.mubr.msk.bf16.vlgmr.msra.gmra.mxu1 %vm364_vm3, %v1900_v50  ;;  %1724 = vmatprep.subr.msk.bf16.mxu0 %vm368_vm2, %v955_v59  ;;  %v961_v61 = vsel %vm368_vm2, %v954_v58, 0 }
  0xba   : > { %v1072_v57 = vpop.permute.xlu0 %1071  ;;  %1796 = vmatpush3.bf16.msra.mxu1 %v845_v55  ;;  %1797 = vmatprep.mubr.msk.bf16.mxu1 %vm2027_vm0, %v2025_v5 }
  0xbb   : > { %v952_v62 = vpop.permute.xlu1 %951  ;;  %1801 = vmatprep.subr.bf16.mxu1 %v2025_v5 }
  0xbc   : > { %v956_v0 = vsel %vm953_vm7, %v950_v47, %v952_v62 }
  0xbd   : > { %1719 = vmatmul.mubr.msk.bf16.vlgmr.msra.gmra.mxu0 %vm364_vm3, %v1901_v60  ;;  %v967_v1 = vsel %vm368_vm2, %v956_v0, 0 }
  0xbe   : > { %v1190_v63 = vpop.permute.xlu0 %1189  ;;  %984 = vmatpush1.bf16.msra.mxu0 %v961_v61  ;;  %1001 = vmatprep.mubr.bf16.mxu0 %v2026_v6 }
  0xbf   : > { %v1070_v2 = vpop.permute.xlu1 %1069 }
  0xc0   : > { %v1076_v3 = vsel %vm1075_vm8, %v1068_v53, %v1070_v2  ;;  %v1077_v4 = vsel %vm1075_vm8, %v1070_v2, %v1072_v57 }
  0xc1   : > { %1798 = vmatmul.mubr.msk.bf16.vlgmr.msra.gmra.mxu1 %vm364_vm3, %v1901_v60  ;;  %1730 = vmatprep.subr.msk.bf16.mxu0 %vm368_vm2, %v1077_v4  ;;  %v1083_v9 = vsel %vm368_vm2, %v1076_v3, 0 }
  0xc2   : > { %v1194_v8 = vpop.permute.xlu0 %1193  ;;  %1802 = vmatpush3.bf16.msra.mxu1 %v967_v1  ;;  %1803 = vmatprep.mubr.msk.bf16.mxu1 %vm2027_vm0, %v2025_v5 }
  0xc3   : > { %v1074_v10 = vpop.permute.xlu1 %1073  ;;  %1807 = vmatprep.subr.bf16.mxu1 %v2025_v5 }
  0xc4   : > { %v1078_v11 = vsel %vm1075_vm8, %v1072_v57, %v1074_v10 }
  0xc5   : > { %1725 = vmatmul.mubr.msk.bf16.vlgmr.msra.gmra.mxu0 %vm364_vm3, %v1902_v7  ;;  %v1089_v12 = vsel %vm368_vm2, %v1078_v11, 0 }
  0xc6   : > { %1106 = vmatpush1.bf16.msra.mxu0 %v1083_v9  ;;  %1123 = vmatprep.mubr.bf16.mxu0 %v2026_v6  ;;  %v1312_v14 = vpop.permute.xlu0 %1311 }
  0xc7   : > { %v1192_v13 = vpop.permute.xlu1 %1191 }
  0xc8   : > { %v1198_v15 = vsel %vm1197_vm9, %v1190_v63, %v1192_v13  ;;  %v1199_v16 = vsel %vm1197_vm9, %v1192_v13, %v1194_v8 }
  0xc9   : > { %1804 = vmatmul.mubr.msk.bf16.vlgmr.msra.gmra.mxu1 %vm364_vm3, %v1902_v7  ;;  %1736 = vmatprep.subr.msk.bf16.mxu0 %vm368_vm2, %v1199_v16  ;;  %v1205_v18 = vsel %vm368_vm2, %v1198_v15, 0 }
  0xca   : > { %1808 = vmatpush3.bf16.msra.mxu1 %v1089_v12  ;;  %1809 = vmatprep.mubr.msk.bf16.mxu1 %vm2027_vm0, %v2025_v5  ;;  %v1316_v21 = vpop.permute.xlu0 %1315 }
  0xcb   : > { %v1196_v19 = vpop.permute.xlu1 %1195  ;;  %1813 = vmatprep.subr.bf16.mxu1 %v2025_v5 }
  0xcc   : > { %v1200_v20 = vsel %vm1197_vm9, %v1194_v8, %v1196_v19 }
  0xcd   : > { %1731 = vmatmul.mubr.msk.bf16.vlgmr.msra.gmra.mxu0 %vm364_vm3, %v1903_v17  ;;  %v1211_v22 = vsel %vm368_vm2, %v1200_v20, 0 }
  0xce   : > { %1228 = vmatpush1.bf16.msra.mxu0 %v1205_v18  ;;  %1245 = vmatprep.mubr.bf16.mxu0 %v2026_v6 }
  0xcf   : > { %v1314_v23 = vpop.permute.xlu1 %1313 }
  0xd0   : > { %v1320_v24 = vsel %vm1319_vm10, %v1312_v14, %v1314_v23  ;;  %v1321_v25 = vsel %vm1319_vm10, %v1314_v23, %v1316_v21 }
  0xd1   : > { %1810 = vmatmul.mubr.msk.bf16.vlgmr.msra.gmra.mxu1 %vm364_vm3, %v1903_v17  ;;  %1742 = vmatprep.subr.msk.bf16.mxu0 %vm368_vm2, %v1321_v25  ;;  %v1327_v27 = vsel %vm368_vm2, %v1320_v24, 0 }
  0xd2   : > { %1814 = vmatpush3.bf16.msra.mxu1 %v1211_v22  ;;  %1815 = vmatprep.mubr.msk.bf16.mxu1 %vm2027_vm0, %v2025_v5 }
  0xd3   : > { %v1318_v28 = vpop.permute.xlu1 %1317  ;;  %1819 = vmatprep.subr.bf16.mxu1 %v2025_v5 }
  0xd4   : > { %v1322_v29 = vsel %vm1319_vm10, %v1316_v21, %v1318_v28  ;;  %v1433_v21 = vlaneseq }
  0xd5   : > { %1737 = vmatmul.mubr.msk.bf16.vlgmr.msra.gmra.mxu0 %vm364_vm3, %v1904_v26  ;;  %v1333_v30 = vsel %vm368_vm2, %v1322_v29, 0 }
  0xd6   : > { %1350 = vmatpush1.bf16.msra.mxu0 %v1327_v27  ;;  %1367 = vmatprep.mubr.bf16.mxu0 %v2026_v6 }
  0xd9   : > { %1816 = vmatmul.mubr.msk.bf16.vlgmr.msra.gmra.mxu1 %vm364_vm3, %v1904_v26 }
  0xda   : > { %1820 = vmatpush3.bf16.msra.mxu1 %v1333_v30  ;;  %1821 = vmatprep.mubr.msk.bf16.mxu1 %vm2027_vm0, %v2025_v5 }
  0xdd   : > { %1743 = vmatmul.mubr.msk.bf16.vlgmr.msra.gmra.mxu0 %vm364_vm3, %v1905_v31 }
  0xe1   : > { %1822 = vmatmul.mubr.msk.bf16.vlgmr.msra.gmra.mxu1 %vm364_vm3, %v1905_v31 }
 0x15d   : > { %v412_v32 = vpop.f32.mrf.mxu0 }
 0x15f   : > { %v414_v33 = vpop.f32.mrf.mxu0 }
 0x161   : > { %v455_v34 = vpop.f32.mrf.mxu1  ;;  %v416_v6 = vpop.f32.mrf.mxu0 }
 0x163   : > { %v1775_v35 = vpop.f32.mrf.mxu1  ;;  %v418_v36 = vpop.f32.mrf.mxu0 }
 0x165   : > { %v2295_v37 = vpop.f32.mrf.mxu1  ;;  %v521_v38 = vpop.f32.mrf.mxu0 }
 0x166   : > { %v522_v18 = vadd.f32 %v521_v38, %v412_v32 }
 0x167   : > { %v1776_v39 = vpop.f32.mrf.mxu1  ;;  %v523_v40 = vpop.f32.mrf.mxu0 }
 0x168   : > { %v524_v22 = vadd.f32 %v523_v40, %v414_v33  ;;  %v1434_v39 = vshrl.u32 %v1433_v21, 7 }
 0x169   : > { %v564_v41 = vpop.f32.mrf.mxu1  ;;  %v525_v42 = vpop.f32.mrf.mxu0 }
 0x16a   : > { %v565_v26 = vadd.f32 %v564_v41, %v455_v34  ;;  %v526_v27 = vadd.f32 %v525_v42, %v416_v6 }
 0x16b   : > { %v1781_v43 = vpop.f32.mrf.mxu1  ;;  %v527_v44 = vpop.f32.mrf.mxu0 }
 0x16c   : > { %v528_v30 = vadd.f32 %v527_v44, %v418_v36 }
 0x16d   : > { %v567_v5 = vpop.f32.mrf.mxu1  ;;  %v637_v45 = vpop.f32.mrf.mxu0 }
 0x16e   : > { %v687_v23 = vadd.f32 %v637_v45, %v522_v18  ;;  %v568_v33 = vadd.f32 %v567_v5, %v2295_v37 }
 0x16f   : > { %v1782_v46 = vpop.f32.mrf.mxu1  ;;  %v639_v47 = vpop.f32.mrf.mxu0 }
 0x170   : > { %v688_v28 = vadd.f32 %v639_v47, %v524_v22 }
 0x171   : > { %v680_v48 = vpop.f32.mrf.mxu1  ;;  %v641_v49 = vpop.f32.mrf.mxu0 }
 0x172   : > { %v689_v32 = vadd.f32 %v680_v48, %v565_v26  ;;  %v690_v38 = vadd.f32 %v641_v49, %v526_v27 }
 0x173   : > { %v1787_v50 = vpop.f32.mrf.mxu1  ;;  %v643_v51 = vpop.f32.mrf.mxu0 }
 0x174   : > { %v691_v40 = vadd.f32 %v643_v51, %v528_v30  ;;  %v1435_v50 = vsub.s32 0, %v1434_v39 }
 0x175   : > { %v683_v52 = vpop.f32.mrf.mxu1  ;;  %v759_v53 = vpop.f32.mrf.mxu0 }
 0x176   : > { %v809_v29 = vadd.f32 %v759_v53, %v687_v23  ;;  %v692_v44 = vadd.f32 %v683_v52, %v568_v33  ;;  %v1439_v53 = vsub.s32 1, %v1434_v39 }
 0x177   : > { %v1788_v54 = vpop.f32.mrf.mxu1  ;;  %v761_v55 = vpop.f32.mrf.mxu0 }
 0x178   : > { %v810_v43 = vadd.f32 %v761_v55, %v688_v28  ;;  %v1431_v55 = vld [vmem:[%s318_s11] sm:$0x7] }
 0x179   : > { %v802_v56 = vpop.f32.mrf.mxu1  ;;  %v763_v57 = vpop.f32.mrf.mxu0 }
 0x17a   : > { %v811_v6 = vadd.f32 %v802_v56, %v689_v32  ;;  %v812_v36 = vadd.f32 %v763_v57, %v690_v38  ;;  %v1443_v57 = vsub.s32 2, %v1434_v39 }
 0x17b   : > { %v1793_v58 = vpop.f32.mrf.mxu1  ;;  %v765_v59 = vpop.f32.mrf.mxu0 }
 0x17c   : > { %v813_v47 = vadd.f32 %v765_v59, %v691_v40  ;;  %v1444_v22 = vrot.slane %v1431_v55, %v1443_v57 }
 0x17d   : > { %v2297_v60 = vpop.f32.mrf.mxu1  ;;  %v881_v61 = vpop.f32.mrf.mxu0 }
 0x17e   : > { %v931_v46 = vadd.f32 %v881_v61, %v809_v29  ;;  %v814_v58 = vadd.f32 %v2297_v60, %v692_v44 }
 0x17f   : > { %v1794_v62 = vpop.f32.mrf.mxu1  ;;  %v883_v63 = vpop.f32.mrf.mxu0 }
 0x180   : > { %v932_v41 = vadd.f32 %v883_v63, %v810_v43 }
 0x181   : > { %v924_v0 = vpop.f32.mrf.mxu1  ;;  %v885_v1 = vpop.f32.mrf.mxu0 }
 0x182   : > { %v933_v54 = vadd.f32 %v924_v0, %v811_v6  ;;  %v934_v37 = vadd.f32 %v885_v1, %v812_v36  ;;  %v1436_v1 = vrot.slane %v1431_v55, %v1435_v50 }
 0x183   : > { %v1799_v2 = vpop.f32.mrf.mxu1  ;;  %v887_v3 = vpop.f32.mrf.mxu0 }
 0x184   : > { %v935_v61 = vadd.f32 %v887_v3, %v813_v47 }
 0x185   : > { %v2299_v4 = vpop.f32.mrf.mxu1  ;;  %v1003_v7 = vpop.f32.mrf.mxu0 }
 0x186   : > { %v1053_v42 = vadd.f32 %v1003_v7, %v931_v46  ;;  %v936_v7 = vadd.f32 %v2299_v4, %v814_v58 }
 0x187   : > { %v1800_v8 = vpop.f32.mrf.mxu1  ;;  %v1005_v9 = vpop.f32.mrf.mxu0 }
 0x188   : > { %v1054_v5 = vadd.f32 %v1005_v9, %v932_v41  ;;  %v1440_v9 = vrot.slane %v1431_v55, %v1439_v53 }
 0x189   : > { %v1046_v10 = vpop.f32.mrf.mxu1  ;;  %v1007_v11 = vpop.f32.mrf.mxu0 }
 0x18a   : > { %v1055_v63 = vadd.f32 %v1046_v10, %v933_v54  ;;  %v1056_v2 = vadd.f32 %v1007_v11, %v934_v37 }
 0x18b   : > { %v1805_v12 = vpop.f32.mrf.mxu1  ;;  %v1009_v13 = vpop.f32.mrf.mxu0 }
 0x18c   : > { %v1057_v8 = vadd.f32 %v1009_v13, %v935_v61 }
 0x18d   : > { %v2301_v14 = vpop.f32.mrf.mxu1  ;;  %v1125_v15 = vpop.f32.mrf.mxu0 }
 0x18e   : > { %v1175_v51 = vadd.f32 %v1125_v15, %v1053_v42  ;;  %v1058_v3 = vadd.f32 %v2301_v14, %v936_v7 }
 0x18f   : > { %v1806_v16 = vpop.f32.mrf.mxu1  ;;  %v1127_v17 = vpop.f32.mrf.mxu0 }
 0x190   : > { %v1176_v52 = vadd.f32 %v1127_v17, %v1054_v5 }
 0x191   : > { %v1168_v19 = vpop.f32.mrf.mxu1  ;;  %v1129_v20 = vpop.f32.mrf.mxu0 }
 0x192   : > { %v1177_v15 = vadd.f32 %v1168_v19, %v1055_v63  ;;  %v1178_v16 = vadd.f32 %v1129_v20, %v1056_v2 }
 0x193   : > { %v1811_v24 = vpop.f32.mrf.mxu1  ;;  %v1131_v25 = vpop.f32.mrf.mxu0 }
 0x194   : > { %v1179_v11 = vadd.f32 %v1131_v25, %v1057_v8 }
 0x195   : > { %v1171_v31 = vpop.f32.mrf.mxu1  ;;  %v1247_v35 = vpop.f32.mrf.mxu0 }
 0x196   : > { %v1297_v59 = vadd.f32 %v1247_v35, %v1175_v51  ;;  %v1180_v13 = vadd.f32 %v1171_v31, %v1058_v3 }
 0x197   : > { %v1812_v45 = vpop.f32.mrf.mxu1  ;;  %v1249_v34 = vpop.f32.mrf.mxu0 }
 0x198   : > { %v1298_v18 = vadd.f32 %v1249_v34, %v1176_v52 }
 0x199   : > { %v1290_v48 = vpop.f32.mrf.mxu1  ;;  %v1251_v49 = vpop.f32.mrf.mxu0 }
 0x19a   : > { %v1299_v17 = vadd.f32 %v1290_v48, %v1177_v15  ;;  %v1300_v23 = vadd.f32 %v1251_v49, %v1178_v16 }
 0x19b   : > { %v1817_v62 = vpop.f32.mrf.mxu1  ;;  %v1253_v56 = vpop.f32.mrf.mxu0 }
 0x19c   : > { %v1301_v14 = vadd.f32 %v1253_v56, %v1179_v11 }
 0x19d   : > { %v1293_v12 = vpop.f32.mrf.mxu1  ;;  %v1369_v0 = vpop.f32.mrf.mxu0 }
 0x19e   : > { %v1419_v60 = vadd.f32 %v1369_v0, %v1297_v59  ;;  %v1302_v30 = vadd.f32 %v1293_v12, %v1180_v13 }
 0x19f   : > { %v1818_v21 = vpop.f32.mrf.mxu1  ;;  %v1371_v10 = vpop.f32.mrf.mxu0 }
 0x1a0   : > { %1425 = vst [vmem:[%s2321_s9] sm:$0xff] %v1419_v60  ;;  %v1420_v4 = vadd.f32 %v1371_v10, %v1298_v18  ;;  %v1448_v19 = vmul.f32 %v1436_v1, %v1419_v60 }
 0x1a1   : > { %v1412_v20 = vpop.f32.mrf.mxu1  ;;  %v1373_v24 = vpop.f32.mrf.mxu0 }
 0x1a2   : > { %v1421_v26 = vadd.f32 %v1412_v20, %v1299_v17  ;;  %1426 = vst [vmem:[%s2321_s9 + $0x8] sm:$0xff] %v1420_v4  ;;  %v1449_v25 = vmul.f32 %v1440_v9, %v1420_v4  ;;  %v1422_v27 = vadd.f32 %v1373_v24, %v1300_v23  ;;  %v1462_v38 = vmul.f32 %v1448_v19, %v1448_v19 }
 0x1a3   : > { %v1823_v28 = vpop.f32.mrf.mxu1  ;;  %v1375_v29 = vpop.f32.mrf.mxu0 }
 0x1a4   : > { %1427 = vst [vmem:[%s2321_s9 + $0x10] sm:$0xff] %v1421_v26  ;;  %v1450_v35 = vmul.f32 %v1444_v22, %v1421_v26  ;;  %v1463_v39 = vmul.f32 %v1449_v25, %v1449_v25  ;;  %1428 = vst [vmem:[%s2321_s9 + $0x18] sm:$0xff] %v1422_v27  ;;  %v1423_v32 = vadd.f32 %v1375_v29, %v1301_v14 }
 0x1a5   : > { %v1451_v31 = vmul.f32 %v1436_v1, %v1422_v27  ;;  %v1415_v43 = vpop.f32.mrf.mxu1  ;;  %v1454_v46 = vadd.f32 %v1449_v25, %v1448_v19 }
 0x1a6   : > { %v1424_v33 = vadd.f32 %v1415_v43, %v1302_v30  ;;  %1429 = vst [vmem:[%s2321_s9 + $0x20] sm:$0xff] %v1423_v32  ;;  %v1452_v40 = vmul.f32 %v1440_v9, %v1423_v32  ;;  %v1464_v6 = vmul.f32 %v1450_v35, %v1450_v35  ;;  %v1468_v36 = vadd.f32 %v1463_v39, %v1462_v38 }
 0x1a7   : > { %v1824_v45 = vpop.f32.mrf.mxu1  ;;  %v1455_v34 = vadd.f32 %v1454_v46, %v1450_v35  ;;  %v1465_v47 = vmul.f32 %v1451_v31, %v1451_v31 }
 0x1a8   : > { %1430 = vst [vmem:[%s2321_s9 + $0x28] sm:$0xff] %v1424_v33  ;;  %v1453_v41 = vmul.f32 %v1444_v22, %v1424_v33  ;;  %v1466_v42 = vmul.f32 %v1452_v40, %v1452_v40  ;;  %v1458_v44 = vadd.f32 %v1452_v40, %v1451_v31  ;;  %v1469_v49 = vadd.f32 %v1468_v36, %v1464_v6 }
 0x1a9   : > { %1456 = vadd.xlane.f32.xlu0 %v1455_v34 }
 0x1aa   : > { %v1459_v48 = vadd.f32 %v1458_v44, %v1453_v41  ;;  %v1467_v50 = vmul.f32 %v1453_v41, %v1453_v41  ;;  %v1472_v53 = vadd.f32 %v1466_v42, %v1465_v47 }
 0x1ac   : > { %1460 = vadd.xlane.f32.xlu1 %v1459_v48  ;;  %v1473_v54 = vadd.f32 %v1472_v53, %v1467_v50 }
 0x1ad   : > { %1470 = vadd.xlane.f32.xlu0 %v1469_v49 }
 0x1b1   : > { %1474 = vadd.xlane.f32.xlu0 %v1473_v54 }
 0x1b2   : > { %1919 = shalt.err (!%p1916_p7)
}
 0x1b3   : > { %s1920_s11 = scalar_lea.hbm %s2336_s17, 768  ;;  %s1924_s14 = scalar_lea.hbm %s2462_s4, 1536 }
 0x1b4   : > { %p1921_p8 = scmp.ne.s32.totalorder %s2336_s17, %s1920_s11  ;;  %p1925_p11 = scmp.lt.s32.totalorder %s2336_s17, %s2462_s4 }
 0x1b5   : > { %p1926_p12 = scmp.lt.s32.totalorder %s1924_s14, %s1920_s11 }
 0x1b6   : > { %p1922_p9 = pnand %p1921_p8, %p2119_p5 }
 0x1b7   : > { %p1927_p13 = por %p1926_p12, %p1925_p11 }
 0x1b8   : > { %p1923_p10 = pneg %p1922_p9 }
 0x1ba   : > { %p1928_p0 = pnand %p1927_p13, %p1923_p10 }
 0x1bc   : > { %1931 = shalt.err (!%p1928_p0)
}
 0x1bd   : > { %s2036_s19 = smov 384   ;;  %s2037_s20 = smov 768  }
 0x1be   : > { %s2038_s29 = smov 24   ;;  %s1682_s10 = sshll.u32 %s2308_s28, 4 }
 0x1bf   : > { %1826 = dma.vmem_to_hbm [thread:$0]  (%p2119_p5), %s2330_s13, 768, %s2336_s17, %s1481_s18, %s2036_s19, %s2037_s20, %s2038_s29  }
 0x1c0   : > { %s293_s12 = scalar_lea.vmem [#allocation5], %s1682_s10  ;;  %s1485_s9 = sand.u32 1, %s2100_s25  }
 0x1c1   : > { %s1519_s11 = sshll.u32 %s293_s12, 4  ;;  %s1748_s14 = sshll.u32 %s2100_s25, 7  ;;  %s2364_s11 = int_to_ptr.vmem [resolvable:$true] %s1519_s11 }
 0x1c2   : > { %s2371_s26 = scalar_lea.hbm %s2463_s5, %s1748_s14  ;;  %s2373_s28 = scalar_lea.vmem [#allocation7], %s1682_s10 }
 0x1c3   : > { %s1534_s13 = sshll.u32 %s2373_s28, 4  ;;  %s2377_s17 = scalar_lea.sflag [#allocation6], %s1485_s9  ;;  %s2405_s13 = int_to_ptr.vmem [resolvable:$true] %s1534_s13 }
 0x1c4   : > { %s1932_s18 = scalar_lea.vmem %s2364_s11, 256  ;;  %s2039_s19 = smov [#allocation5]  }
 0x1c5   : > { %p1933_p1 = scmp.ne.s32.totalorder %s2364_s11, %s1932_s18  ;;  %s1936_s20 = sshll.u32 %s2039_s19, 4  ;;  %s1937_s20 = int_to_ptr.vmem [resolvable:$false] %s1936_s20 }
 0x1c6   : > { %s1938_s29 = scalar_lea.vmem %s1937_s20, 512  ;;  %p1939_p4 = scmp.lt.s32.totalorder %s2364_s11, %s1937_s20 }
 0x1c7   : > { %p1934_p2 = pnand %p1933_p1, %p2119_p5  ;;  %p1940_p7 = scmp.lt.s32.totalorder %s1938_s29, %s1932_s18 }
 0x1c9   : > { %p1935_p3 = pneg %p1934_p2  ;;  %p1941_p8 = por %p1940_p7, %p1939_p4 }
 0x1cb   : > { %p1942_p9 = pnand %p1941_p8, %p1935_p3 }
 0x232   : > { %v1457_v37 = vpop.xlane.xlu0 %1456 }
 0x233   : > { %1476 = vst [vmem:[%s293_s12] sm:$0xff] %v1457_v37 }
 0x235   : > { %v1461_v5 = vpop.xlane.xlu1 %1460 }
 0x236   : > { %1477 = vst [vmem:[%s293_s12 + $0x8] sm:$0xff] %v1461_v5  ;;  %v1471_v51 = vpop.xlane.xlu0 %1470 }
 0x237   : > { %1478 = vst [vmem:[%s2373_s28] sm:$0xff] %v1471_v51 }
 0x238   : > { %1945 = shalt.err (!%p1942_p9)
}
 0x239   : > { %s1946_s10 = scalar_lea.hbm %s2371_s26, 256  ;;  %s1950_s15 = scalar_lea.hbm %s2463_s5, 512 }
 0x23a   : > { %p1947_p10 = scmp.ne.s32.totalorder %s2371_s26, %s1946_s10  ;;  %p1951_p13 = scmp.lt.s32.totalorder %s2371_s26, %s2463_s5 }
 0x23b   : > { %p1952_p0 = scmp.lt.s32.totalorder %s1950_s15, %s1946_s10 }
 0x23c   : > { %p1948_p11 = pnand %p1947_p10, %p2119_p5 }
 0x23d   : > { %p1953_p1 = por %p1952_p0, %p1951_p13 }
 0x23e   : > { %p1949_p12 = pneg %p1948_p11 }
 0x240   : > { %p1954_p2 = pnand %p1953_p1, %p1949_p12 }
 0x242   : > { %1957 = shalt.err (!%p1954_p2)
}
 0x243   : > { %s2040_s18 = smov 128   ;;  %s2041_s20 = smov 256   ;;  %v1475_v55 = vpop.xlane.xlu0 %1474 }
 0x244   : > { %s2042_s29 = smov 8   ;;  %s2412_s9 = scalar_lea.hbm %s2464_s6, %s1748_s14  ;;  %1479 = vst [vmem:[%s2373_s28 + $0x8] sm:$0xff] %v1475_v55 }
 0x245   : > { %1827 = dma.vmem_to_hbm [thread:$0]  (%p2119_p5), %s2364_s11, 256, %s2371_s26, %s2377_s17, %s2040_s18, %s2041_s20, %s2042_s29  }
 0x246   : > { %s1958_s15 = scalar_lea.vmem %s2405_s13, 256  ;;  %s2043_s26 = smov [#allocation7]  }
 0x247   : > { %p1959_p3 = scmp.ne.s32.totalorder %s2405_s13, %s1958_s15  ;;  %s1962_s11 = sshll.u32 %s2043_s26, 4  ;;  %s1963_s11 = int_to_ptr.vmem [resolvable:$false] %s1962_s11 }
 0x248   : > { %s1964_s16 = scalar_lea.vmem %s1963_s11, 512  ;;  %p1965_p8 = scmp.lt.s32.totalorder %s2405_s13, %s1963_s11 }
 0x249   : > { %p1960_p4 = pnand %p1959_p3, %p2119_p5  ;;  %p1966_p9 = scmp.lt.s32.totalorder %s1964_s16, %s1958_s15 }
 0x24b   : > { %p1961_p7 = pneg %p1960_p4  ;;  %p1967_p10 = por %p1966_p9, %p1965_p8 }
 0x24d   : > { %p1968_p11 = pnand %p1967_p10, %p1961_p7 }
 0x24f   : > { %1971 = shalt.err (!%p1968_p11)
}
 0x250   : > { %s1972_s25 = scalar_lea.hbm %s2412_s9, 256  ;;  %s1976_s19 = scalar_lea.hbm %s2464_s6, 512 }
 0x251   : > { %p1973_p12 = scmp.ne.s32.totalorder %s2412_s9, %s1972_s25  ;;  %p1977_p1 = scmp.lt.s32.totalorder %s2412_s9, %s2464_s6 }
 0x252   : > { %p1978_p2 = scmp.lt.s32.totalorder %s1976_s19, %s1972_s25 }
 0x253   : > { %p1974_p13 = pnand %p1973_p12, %p2119_p5 }
 0x254   : > { %p1979_p3 = por %p1978_p2, %p1977_p1 }
 0x255   : > { %p1975_p0 = pneg %p1974_p13 }
 0x257   : > { %p1980_p4 = pnand %p1979_p3, %p1975_p0 }
 0x259   : > { %1983 = shalt.err (!%p1980_p4)
}
 0x25a   : > { %1828 = dma.vmem_to_hbm [thread:$0]  (%p2119_p5), %s2405_s13, 256, %s2412_s9, %s2377_s17, %s2040_s18, %s2041_s20, %s2042_s29  }
 0x25b PF: > { %p1842_p7 = scmp.ge.s32.totalorder %s2022_s24, 2  ;;  %s1549_s15 = sand.u32 1, %s2010_s21  }
 0x25c   : > { %s1550_s26 = scalar_lea.sflag [#allocation4], %s1549_s15 }
 0x25d   : > { %p1833_p8 = pnand %p1842_p7, %p2123_p6 }
 0x25f   : > { %p1834_p9 = pneg %p1833_p8 }
 0x261   : > { %2001 = dma.done.wait (%p1834_p9), %s1550_s26, 768  }
 0x262   : > { %2003 = vsyncadd (%p1834_p9), %s1550_s26, 4294966528  ;;  %s2468_s7 = sadd.s32 4294967294, %s2022_s24  }
 0x263   : > { %s1558_s11 = sand.u32 1, %s2468_s7  }
 0x264   : > { %s1559_s16 = scalar_lea.sflag [#allocation6], %s1558_s11 }
 0x265   : > { %2005 = dma.done.wait (%p1834_p9), %s1559_s16, 512  }
 0x266   : > { %2007 = vsyncadd (%p1834_p9), %s1559_s16, 4294966784  ;;  %p20_p5 = scmp.ge.s32.totalorder %s2104_s27, 4   ;;  %s2469_s21 = smov %s2014_s22 }
 0x267   : > { %s2470_s22 = smov %s2018_s23  ;;  %s2471_s23 = smov %s2117_s30 }
 0x268   : > { %s2472_s24 = smov %s2104_s27  ;;  %22 = sbr.rel (!%p20_p5) target bundleno = 5 (0x5), region = 117 }
 0x26d   :  { %1573 = vsyncpa [#allocation4], 1 }
 0x26e   :  { %1575 = vsyncpa [#allocation4 + $0x1], 1 }
 0x26f   :  { %1576 = vsyncpa [#allocation6], 1 }
 0x270   :  { %1578 = vsyncpa [#allocation6 + $0x1], 1 }

</bundles_post_ra>
